<compile_context>
chip_gen: v7x
topology: tpu7x:2x2x1
jax: 0.10.0
libtpu: 0.0.40
codegen_flags: <defaults>
</compile_context>

<pallas_src>
import functools

import jax
import jax.numpy as jnp
from jax import lax
from jax.experimental import pallas as pl
from jax.experimental.pallas import tpu as pltpu

_LANE = 128          # TPU lane width; feature / rule axes are padded to this
_NEG_BIG = -1e30     # "minus infinity" bias for padded rule lanes -> prob exactly 0


def _attention_kernel(x_ref, w1_ref, b1_ref, w2_ref, b2_ref, ones_ref, pmat_ref,
                      out_ref, *, n_rules, nclass):
    """One batch tile.

    x_ref    : (T, 128) bf16   [x_lf | x_l | 0-pad]
    w1_ref   : (128, 128) bf16 fc1 weight (zero rows >= nfeat, zero cols >= nhidden)
    b1_ref   : (1, 128)  f32   fc1 bias (zero beyond nhidden)
    w2_ref   : (128, 128) bf16 fc2 weight (zero rows >= nhidden, zero cols >= n_rules)
    b2_ref   : (1, 128)  f32   fc2 bias (-1e30 beyond n_rules)
    ones_ref : (128, 128) bf16 all-ones (MXU row-sum, lane-replicated result)
    pmat_ref : (nclass, 128, 128) bf16; P_k has column (n_rules+k) all ones
    out_ref  : (T, 128)  f32   lanes [0, n_rules)          -> coverage_score
                               lanes [n_rules, n_rules+nc) -> log_softmax(score_matrix)
    """
    f32, bf16 = jnp.float32, jnp.bfloat16
    xb = x_ref[...]                                               # (T, 128) bf16

    # --- fc1 -> tanh -> fc2 (MXU, bf16 operands / f32 accumulation) ----------
    h = jnp.tanh(jnp.dot(xb, w1_ref[...], preferred_element_type=f32)
                 + b1_ref[...])
    z = jnp.dot(h.astype(bf16), w2_ref[...], preferred_element_type=f32) \
        + b2_ref[...]            # padded lanes get -1e30 (f32) -> prob exactly 0

    # --- softmax over the (padded) rule axis ---------------------------------
    z_max = jnp.max(z, axis=1, keepdims=True)      # the only XLU reduction kept
    e = jnp.exp(z - z_max)                         # padded lanes underflow to 0
    ones_b = ones_ref[...]
    # Row-sum on the MXU; result is lane-replicated so no broadcast is needed.
    denom = jnp.dot(e.astype(bf16), ones_b, preferred_element_type=f32)
    score = e * pl.reciprocal(denom, approx=True)  # EUP slot

    # coverage_score: lanes >= n_rules stay exactly 0 because score is exactly 0.
    cov = jnp.where(xb >= 0, score, 0.0)

    # --- score_matrix[:, k] = sum_r score[:, r] * (x_lf[:, r] == k) ----------
    # Each class sum is a masked MXU dot whose RHS also *places* the sum in
    # output lane (n_rules + k); accumulating the nclass dots builds the class
    # block of the output slab directly (no (T,1)-column tail).
    cls = jnp.dot(jnp.where(xb == 0, score, 0.0).astype(bf16),
                  pmat_ref[0], preferred_element_type=f32)
    for k in range(1, nclass):
        cls = cls + jnp.dot(jnp.where(xb == k, score, 0.0).astype(bf16),
                            pmat_ref[k], preferred_element_type=f32)

    # --- log_softmax over the nclass lanes, done lane-packed -----------------
    lane = lax.broadcasted_iota(jnp.int32, cls.shape, 1)
    in_cls = (lane >= n_rules) & (lane < n_rules + nclass)
    # Class sums are in [0, 1] -> exp needs no max-subtraction for stability;
    # non-class lanes are pushed to -1e30 so their exp is exactly 0.
    p = jnp.exp(jnp.where(in_cls, cls, _NEG_BIG))
    s = jnp.dot(p.astype(bf16), ones_b, preferred_element_type=f32)
    logp = cls - jnp.log(s)

    # lanes [0, n_rules) -> coverage, lanes [n_rules, n_rules+nclass) -> logp
    out_ref[...] = jnp.where(in_cls, logp, cov)


def _round_up(n, m):
    return (n + m - 1) // m * m


def _cdiv(a, b):
    return -(-a // b)


def _choose_batch_tiling(B, *, tile_b_max=1024, min_steps=2):
    """Pick (tile_rows, padded_batch).

    * tile_rows is a multiple of 8 (f32 sublane tiling) and <= tile_b_max,
    * >= min_steps grid steps (and an even count) so both v7x TensorCores get
      work under dimension_semantics=("parallel",),
    * padded rows bounded by the tile alignment (no round-up of B to a fixed
      large tile).
    """
    B = max(int(B), 1)
    n_steps = max(min_steps, _cdiv(B, tile_b_max))
    if n_steps > 1 and n_steps % 2:
        n_steps += 1
    tb = _round_up(_cdiv(B, n_steps), 8)
    tb = min(tb, _round_up(tile_b_max, 8))
    Bp = _round_up(B, tb)
    return tb, Bp


def attention_model_forward(x_lf, x_l, w1, b1, w2, b2, *, nclass,
                            tile_b=1024, interpret=False):
    """Forward pass of AttentionModel.

    x_lf : (B, n_rules) float  LF votes in {-1, 0, ..., nclass-1}
    x_l  : (B, d_l)     float  extra features (nfeat = n_rules + d_l)
    w1   : (nfeat, nhidden), b1: (nhidden,)   -- input-major (transposed vs torch)
    w2   : (nhidden, n_rules), b2: (n_rules,)
    Returns (log_softmax(score_matrix) (B, nclass), coverage_score (B, n_rules)).
    """
    B, n_rules = x_lf.shape
    d_l = x_l.shape[1]
    nfeat = n_rules + d_l
    nhidden = w1.shape[1]
    assert w1.shape == (nfeat, nhidden)
    assert w2.shape == (nhidden, n_rules)
    # TODO(synk): models wider than one 128-lane vreg would need a tiled feature axis.
    assert nfeat <= _LANE and nhidden <= _LANE and n_rules + nclass <= _LANE

    f32, bf16 = jnp.float32, jnp.bfloat16

    # Lane-pad parameters once (tiny; VMEM-resident across all grid steps).
    # Matmul operands in bf16; biases (incl. the -1e30 "minus infinity" path)
    # stay f32 so padded-lane probabilities are EXACTLY 0.
    w1p = jnp.zeros((_LANE, _LANE), bf16).at[:nfeat, :nhidden].set(w1.astype(bf16))
    b1p = jnp.zeros((1, _LANE), f32).at[0, :nhidden].set(b1.astype(f32))
    w2p = jnp.zeros((_LANE, _LANE), bf16).at[:nhidden, :n_rules].set(w2.astype(bf16))
    b2p = jnp.full((1, _LANE), _NEG_BIG, f32).at[0, :n_rules].set(b2.astype(f32))
    ones_b = jnp.ones((_LANE, _LANE), bf16)                   # MXU row-sum RHS
    lane_ids = jnp.arange(_LANE)
    pmat = jnp.stack([                                        # class-sum placement RHS
        jnp.broadcast_to((lane_ids == n_rules + k).astype(bf16), (_LANE, _LANE))
        for k in range(nclass)])

    # Batch tiling: derived from B, >= 2 (even) grid steps, minimal padding.
    tb, Bp = _choose_batch_tiling(B, tile_b_max=tile_b)

    # Single lane-dense bf16 activation stream: [x_lf | x_l | 0-pad],
    # packed with one concat + one pad (single XLA pass over the buffer).
    x = jnp.concatenate([x_lf.astype(bf16), x_l.astype(bf16)], axis=1)
    x = jnp.pad(x, ((0, Bp - B), (0, _LANE - nfeat)))

    kernel = functools.partial(_attention_kernel, n_rules=n_rules, nclass=nclass)

    out = pl.pallas_call(
        kernel,
        out_shape=jax.ShapeDtypeStruct((Bp, _LANE), f32),
        grid=(Bp // tb,),
        in_specs=[
            pl.BlockSpec((tb, _LANE), lambda i: (i, 0)),            # x      (streamed)
            pl.BlockSpec((_LANE, _LANE), lambda i: (0, 0)),         # w1     (resident)
            pl.BlockSpec((1, _LANE), lambda i: (0, 0)),             # b1     (resident)
            pl.BlockSpec((_LANE, _LANE), lambda i: (0, 0)),         # w2     (resident)
            pl.BlockSpec((1, _LANE), lambda i: (0, 0)),             # b2     (resident)
            pl.BlockSpec((_LANE, _LANE), lambda i: (0, 0)),         # ones   (resident)
            pl.BlockSpec((nclass, _LANE, _LANE), lambda i: (0, 0, 0)),  # pmat (resident)
        ],
        out_specs=pl.BlockSpec((tb, _LANE), lambda i: (i, 0)),
        compiler_params=pltpu.CompilerParams(
            dimension_semantics=("parallel",),
            vmem_limit_bytes=32 * 1024 * 1024,
        ),
        interpret=interpret,
    )(x, w1p, b1p, w2p, b2p, ones_b, pmat)

    # TODO(synk): if the consumer accepts the packed 128-lane slab directly,
    # skip these two slices to save an extra HBM pass.
    logp = out[:B, n_rules:n_rules + nclass]
    cov = out[:B, :n_rules]
    return logp, cov


def _reference_forward_f32(x_lf, x_l, w1, b1, w2, b2, *, nclass):
    """Pure-f32 mirror of the PyTorch forward (semantic reference)."""
    x = jnp.concatenate([x_lf, x_l], axis=1)
    z = jnp.tanh(x @ w1 + b1) @ w2 + b2
    score = jax.nn.softmax(z, axis=1)
    coverage = score * (x_lf >= 0).astype(jnp.float32)
    cols = [jnp.sum(score * (x_lf == k).astype(jnp.float32), axis=1)
            for k in range(nclass)]
    score_matrix = jnp.stack(cols, axis=1)
    return jax.nn.log_softmax(score_matrix, axis=1), coverage


def _reference_forward_mixed(x_lf, x_l, w1, b1, w2, b2, *, nclass):
    """Pure-JAX mirror of the kernel numerics: bf16 matmul operands with f32
    accumulation, bf16-rounded MXU row-sums, f32 softmax (exact division in
    place of the in-kernel approximate reciprocal)."""
    f32, bf16 = jnp.float32, jnp.bfloat16
    x = jnp.concatenate([x_lf, x_l], axis=1)
    h = jnp.tanh(jnp.dot(x.astype(bf16), w1.astype(bf16),
                         preferred_element_type=f32) + b1)
    z = jnp.dot(h.astype(bf16), w2.astype(bf16),
                preferred_element_type=f32) + b2
    e = jnp.exp(z - jnp.max(z, axis=1, keepdims=True))
    denom = jnp.sum(e.astype(bf16).astype(f32), axis=1, keepdims=True)
    score = e / denom
    coverage = jnp.where(x_lf >= 0, score, 0.0)
    cols = [jnp.sum(jnp.where(x_lf == k, score, 0.0).astype(bf16).astype(f32),
                    axis=1) for k in range(nclass)]
    cls = jnp.stack(cols, axis=1)
    s = jnp.sum(jnp.exp(cls).astype(bf16).astype(f32), axis=1, keepdims=True)
    return cls - jnp.log(s), coverage


def _make_inputs(key, B, n_rules, d_l, nhidden, nclass):
    nfeat = n_rules + d_l
    k_lf, k_xl, k_w1, k_b1, k_w2, k_b2 = jax.random.split(key, 6)
    x_lf = jax.random.randint(k_lf, (B, n_rules), -1, nclass).astype(jnp.float32)
    x_l = jax.random.normal(k_xl, (B, d_l), dtype=jnp.float32)
    s1 = 1.0 / jnp.sqrt(jnp.float32(nfeat))
    s2 = 1.0 / jnp.sqrt(jnp.float32(nhidden))
    w1 = jax.random.uniform(k_w1, (nfeat, nhidden), jnp.float32, -s1, s1)
    b1 = jax.random.uniform(k_b1, (nhidden,), jnp.float32, -s1, s1)
    w2 = jax.random.uniform(k_w2, (nhidden, n_rules), jnp.float32, -s2, s2)
    b2 = jax.random.uniform(k_b2, (n_rules,), jnp.float32, -s2, s2)
    return x_lf, x_l, w1, b1, w2, b2


def _check(args, nclass, tile_b):
    logp, cov = attention_model_forward(*args, nclass=nclass, tile_b=tile_b)
    jax.block_until_ready((logp, cov))
    B, n_rules = args[0].shape
    assert logp.shape == (B, nclass) and cov.shape == (B, n_rules)

    # Tight check vs a reference that mirrors the kernel's mixed precision
    # (residual error: approximate reciprocal + summation-order differences).
    m_logp, m_cov = _reference_forward_mixed(*args, nclass=nclass)
    assert jnp.allclose(logp, m_logp, atol=2e-3, rtol=2e-3)
    assert jnp.allclose(cov, m_cov, atol=2e-3, rtol=2e-3)

    # Looser check vs the pure-f32 semantic reference (dominated by the bf16
    # matmul-operand rounding the review asked for).
    r_logp, r_cov = _reference_forward_f32(*args, nclass=nclass)
    assert jnp.allclose(logp, r_logp, atol=3e-2, rtol=3e-2)
    assert jnp.allclose(cov, r_cov, atol=3e-2, rtol=3e-2)


if __name__ == "__main__":
    n_rules, d_l, nhidden, nclass = 8, 24, 32, 4
    key = jax.random.PRNGKey(0)
    k0, k1 = jax.random.split(key)

    # Case 1: small batch (2 grid steps of 32 rows each, no padding).
    _check(_make_inputs(k0, 64, n_rules, d_l, nhidden, nclass), nclass, tile_b=1024)

    # Case 2: multi-step grid + batch padding path (B=90, tile_b=16 -> 6 steps).
    _check(_make_inputs(k1, 90, n_rules, d_l, nhidden, nclass), nclass, tile_b=16)

    print("KERNEL_OK")
</pallas_src>

<mosaic_0001>
module attributes {stable_mosaic.version = 11 : i64} {
  func.func @_attention_kernel(%arg0: i32, %arg1: memref<32x128xbf16, #tpu.memory_space<vmem>>, %arg2: memref<128x128xbf16, #tpu.memory_space<vmem>>, %arg3: memref<1x128xf32, #tpu.memory_space<vmem>>, %arg4: memref<128x128xbf16, #tpu.memory_space<vmem>>, %arg5: memref<1x128xf32, #tpu.memory_space<vmem>>, %arg6: memref<128x128xbf16, #tpu.memory_space<vmem>>, %arg7: memref<4x128x128xbf16, #tpu.memory_space<vmem>>, %arg8: memref<32x128xf32, #tpu.memory_space<vmem>>) attributes {dimension_semantics = [#tpu.dimension_semantics<parallel>], iteration_bounds = array<i64: 2>, scalar_prefetch = 0 : i64, scratch_operands = 0 : i64, tpu.core_type = #tpu.core_type<tc>, window_params = [{transform_indices = @transform_0, window_bounds = array<i64: 32, 128>}, {pipeline_mode = #tpu.pipeline_mode<synchronous>, transform_indices = @transform_1, window_bounds = array<i64: 128, 128>}, {pipeline_mode = #tpu.pipeline_mode<synchronous>, transform_indices = @transform_2, window_bounds = array<i64: 1, 128>}, {pipeline_mode = #tpu.pipeline_mode<synchronous>, transform_indices = @transform_3, window_bounds = array<i64: 128, 128>}, {pipeline_mode = #tpu.pipeline_mode<synchronous>, transform_indices = @transform_4, window_bounds = array<i64: 1, 128>}, {pipeline_mode = #tpu.pipeline_mode<synchronous>, transform_indices = @transform_5, window_bounds = array<i64: 128, 128>}, {pipeline_mode = #tpu.pipeline_mode<synchronous>, transform_indices = @transform_6, window_bounds = array<i64: 4, 128, 128>}, {transform_indices = @transform_7, window_bounds = array<i64: 32, 128>}]} {
    %c0 = arith.constant 0 : index
    %c0_0 = arith.constant 0 : index
    %0 = vector.load %arg1[%c0, %c0_0] : memref<32x128xbf16, #tpu.memory_space<vmem>>, vector<32x128xbf16>
    %c0_1 = arith.constant 0 : index
    %c0_2 = arith.constant 0 : index
    %1 = vector.load %arg2[%c0_1, %c0_2] : memref<128x128xbf16, #tpu.memory_space<vmem>>, vector<128x128xbf16>
    %cst = arith.constant dense<0.000000e+00> : vector<32x128xf32>
    %2 = tpu.matmul %0, %1, %cst {dimension_numbers = #tpu.dot_dimension_numbers<[1], [0], [0], [1], [0, 0, 1, 1], [], []>} : vector<32x128xbf16>, vector<128x128xbf16>, vector<32x128xf32> -> vector<32x128xf32>
    %c0_3 = arith.constant 0 : index
    %c0_4 = arith.constant 0 : index
    %3 = vector.load %arg3[%c0_3, %c0_4] : memref<1x128xf32, #tpu.memory_space<vmem>>, vector<1x128xf32>
    %4 = vector.broadcast %3 : vector<1x128xf32> to vector<32x128xf32>
    %5 = arith.addf %2, %4 : vector<32x128xf32>
    %6 = math.tanh %5 : vector<32x128xf32>
    %7 = arith.truncf %6 : vector<32x128xf32> to vector<32x128xbf16>
    %c0_5 = arith.constant 0 : index
    %c0_6 = arith.constant 0 : index
    %8 = vector.load %arg4[%c0_5, %c0_6] : memref<128x128xbf16, #tpu.memory_space<vmem>>, vector<128x128xbf16>
    %cst_7 = arith.constant dense<0.000000e+00> : vector<32x128xf32>
    %9 = tpu.matmul %7, %8, %cst_7 {dimension_numbers = #tpu.dot_dimension_numbers<[1], [0], [0], [1], [0, 0, 1, 1], [], []>} : vector<32x128xbf16>, vector<128x128xbf16>, vector<32x128xf32> -> vector<32x128xf32>
    %c0_8 = arith.constant 0 : index
    %c0_9 = arith.constant 0 : index
    %10 = vector.load %arg5[%c0_8, %c0_9] : memref<1x128xf32, #tpu.memory_space<vmem>>, vector<1x128xf32>
    %11 = vector.broadcast %10 : vector<1x128xf32> to vector<32x128xf32>
    %12 = arith.addf %9, %11 : vector<32x128xf32>
    %cst_10 = arith.constant dense<0xFF800000> : vector<32xf32>
    %13 = vector.multi_reduction <maximumf>, %12, %cst_10 [1] : vector<32x128xf32> to vector<32xf32>
    %14 = vector.shape_cast %13 : vector<32xf32> to vector<32x1xf32>
    %15 = vector.broadcast %14 : vector<32x1xf32> to vector<32x128xf32>
    %16 = arith.subf %12, %15 : vector<32x128xf32>
    %17 = math.exp %16 : vector<32x128xf32>
    %c0_11 = arith.constant 0 : index
    %c0_12 = arith.constant 0 : index
    %18 = vector.load %arg6[%c0_11, %c0_12] : memref<128x128xbf16, #tpu.memory_space<vmem>>, vector<128x128xbf16>
    %19 = arith.truncf %17 : vector<32x128xf32> to vector<32x128xbf16>
    %cst_13 = arith.constant dense<0.000000e+00> : vector<32x128xf32>
    %20 = tpu.matmul %19, %18, %cst_13 {dimension_numbers = #tpu.dot_dimension_numbers<[1], [0], [0], [1], [0, 0, 1, 1], [], []>} : vector<32x128xbf16>, vector<128x128xbf16>, vector<32x128xf32> -> vector<32x128xf32>
    %21 = tpu.reciprocal %20 {approx = true} : vector<32x128xf32> -> vector<32x128xf32>
    %22 = arith.mulf %17, %21 : vector<32x128xf32>
    %cst_14 = arith.constant 0.000000e+00 : bf16
    %23 = vector.broadcast %cst_14 : bf16 to vector<32x128xbf16>
    %24 = arith.cmpf oge, %0, %23 : vector<32x128xbf16>
    %cst_15 = arith.constant 0.000000e+00 : f32
    %25 = vector.broadcast %cst_15 : f32 to vector<32x128xf32>
    %26 = arith.select %24, %22, %25 : vector<32x128xi1>, vector<32x128xf32>
    %cst_16 = arith.constant 0.000000e+00 : bf16
    %27 = vector.broadcast %cst_16 : bf16 to vector<32x128xbf16>
    %28 = arith.cmpf oeq, %0, %27 : vector<32x128xbf16>
    %cst_17 = arith.constant 0.000000e+00 : f32
    %29 = vector.broadcast %cst_17 : f32 to vector<32x128xf32>
    %30 = arith.select %28, %22, %29 : vector<32x128xi1>, vector<32x128xf32>
    %31 = arith.truncf %30 : vector<32x128xf32> to vector<32x128xbf16>
    %c0_18 = arith.constant 0 : index
    %c0_19 = arith.constant 0 : index
    %c0_20 = arith.constant 0 : index
    %32 = vector.load %arg7[%c0_18, %c0_19, %c0_20] : memref<4x128x128xbf16, #tpu.memory_space<vmem>>, vector<1x128x128xbf16>
    %33 = vector.shape_cast %32 : vector<1x128x128xbf16> to vector<128x128xbf16>
    %cst_21 = arith.constant dense<0.000000e+00> : vector<32x128xf32>
    %34 = tpu.matmul %31, %33, %cst_21 {dimension_numbers = #tpu.dot_dimension_numbers<[1], [0], [0], [1], [0, 0, 1, 1], [], []>} : vector<32x128xbf16>, vector<128x128xbf16>, vector<32x128xf32> -> vector<32x128xf32>
    %cst_22 = arith.constant 1.000000e+00 : bf16
    %35 = vector.broadcast %cst_22 : bf16 to vector<32x128xbf16>
    %36 = arith.cmpf oeq, %0, %35 : vector<32x128xbf16>
    %cst_23 = arith.constant 0.000000e+00 : f32
    %37 = vector.broadcast %cst_23 : f32 to vector<32x128xf32>
    %38 = arith.select %36, %22, %37 : vector<32x128xi1>, vector<32x128xf32>
    %39 = arith.truncf %38 : vector<32x128xf32> to vector<32x128xbf16>
    %c1 = arith.constant 1 : index
    %c0_24 = arith.constant 0 : index
    %c0_25 = arith.constant 0 : index
    %40 = vector.load %arg7[%c1, %c0_24, %c0_25] : memref<4x128x128xbf16, #tpu.memory_space<vmem>>, vector<1x128x128xbf16>
    %41 = vector.shape_cast %40 : vector<1x128x128xbf16> to vector<128x128xbf16>
    %cst_26 = arith.constant dense<0.000000e+00> : vector<32x128xf32>
    %42 = tpu.matmul %39, %41, %cst_26 {dimension_numbers = #tpu.dot_dimension_numbers<[1], [0], [0], [1], [0, 0, 1, 1], [], []>} : vector<32x128xbf16>, vector<128x128xbf16>, vector<32x128xf32> -> vector<32x128xf32>
    %43 = arith.addf %34, %42 : vector<32x128xf32>
    %cst_27 = arith.constant 2.000000e+00 : bf16
    %44 = vector.broadcast %cst_27 : bf16 to vector<32x128xbf16>
    %45 = arith.cmpf oeq, %0, %44 : vector<32x128xbf16>
    %cst_28 = arith.constant 0.000000e+00 : f32
    %46 = vector.broadcast %cst_28 : f32 to vector<32x128xf32>
    %47 = arith.select %45, %22, %46 : vector<32x128xi1>, vector<32x128xf32>
    %48 = arith.truncf %47 : vector<32x128xf32> to vector<32x128xbf16>
    %c2 = arith.constant 2 : index
    %c0_29 = arith.constant 0 : index
    %c0_30 = arith.constant 0 : index
    %49 = vector.load %arg7[%c2, %c0_29, %c0_30] : memref<4x128x128xbf16, #tpu.memory_space<vmem>>, vector<1x128x128xbf16>
    %50 = vector.shape_cast %49 : vector<1x128x128xbf16> to vector<128x128xbf16>
    %cst_31 = arith.constant dense<0.000000e+00> : vector<32x128xf32>
    %51 = tpu.matmul %48, %50, %cst_31 {dimension_numbers = #tpu.dot_dimension_numbers<[1], [0], [0], [1], [0, 0, 1, 1], [], []>} : vector<32x128xbf16>, vector<128x128xbf16>, vector<32x128xf32> -> vector<32x128xf32>
    %52 = arith.addf %43, %51 : vector<32x128xf32>
    %cst_32 = arith.constant 3.000000e+00 : bf16
    %53 = vector.broadcast %cst_32 : bf16 to vector<32x128xbf16>
    %54 = arith.cmpf oeq, %0, %53 : vector<32x128xbf16>
    %cst_33 = arith.constant 0.000000e+00 : f32
    %55 = vector.broadcast %cst_33 : f32 to vector<32x128xf32>
    %56 = arith.select %54, %22, %55 : vector<32x128xi1>, vector<32x128xf32>
    %57 = arith.truncf %56 : vector<32x128xf32> to vector<32x128xbf16>
    %c3 = arith.constant 3 : index
    %c0_34 = arith.constant 0 : index
    %c0_35 = arith.constant 0 : index
    %58 = vector.load %arg7[%c3, %c0_34, %c0_35] : memref<4x128x128xbf16, #tpu.memory_space<vmem>>, vector<1x128x128xbf16>
    %59 = vector.shape_cast %58 : vector<1x128x128xbf16> to vector<128x128xbf16>
    %cst_36 = arith.constant dense<0.000000e+00> : vector<32x128xf32>
    %60 = tpu.matmul %57, %59, %cst_36 {dimension_numbers = #tpu.dot_dimension_numbers<[1], [0], [0], [1], [0, 0, 1, 1], [], []>} : vector<32x128xbf16>, vector<128x128xbf16>, vector<32x128xf32> -> vector<32x128xf32>
    %61 = arith.addf %52, %60 : vector<32x128xf32>
    %62 = tpu.iota {dimensions = array<i32: 1>} : vector<32x128xi32>
    %c8_i32 = arith.constant 8 : i32
    %63 = vector.broadcast %c8_i32 : i32 to vector<32x128xi32>
    %64 = arith.cmpi sge, %62, %63 : vector<32x128xi32>
    %c12_i32 = arith.constant 12 : i32
    %65 = vector.broadcast %c12_i32 : i32 to vector<32x128xi32>
    %66 = arith.cmpi slt, %62, %65 : vector<32x128xi32>
    %67 = arith.andi %64, %66 : vector<32x128xi1>
    %cst_37 = arith.constant -1.000000e+30 : f32
    %68 = vector.broadcast %cst_37 : f32 to vector<32x128xf32>
    %69 = arith.select %67, %61, %68 : vector<32x128xi1>, vector<32x128xf32>
    %70 = math.exp %69 : vector<32x128xf32>
    %71 = arith.truncf %70 : vector<32x128xf32> to vector<32x128xbf16>
    %cst_38 = arith.constant dense<0.000000e+00> : vector<32x128xf32>
    %72 = tpu.matmul %71, %18, %cst_38 {dimension_numbers = #tpu.dot_dimension_numbers<[1], [0], [0], [1], [0, 0, 1, 1], [], []>} : vector<32x128xbf16>, vector<128x128xbf16>, vector<32x128xf32> -> vector<32x128xf32>
    %73 = math.log %72 : vector<32x128xf32>
    %74 = arith.subf %61, %73 : vector<32x128xf32>
    %75 = arith.select %67, %74, %26 : vector<32x128xi1>, vector<32x128xf32>
    %c0_39 = arith.constant 0 : index
    %c0_40 = arith.constant 0 : index
    %76 = vector.load %arg8[%c0_39, %c0_40] : memref<32x128xf32, #tpu.memory_space<vmem>>, vector<32x128xf32>
    tpu.vector_store %arg8[%c0_39, %c0_40], %75 {strides = array<i32>} : memref<32x128xf32, #tpu.memory_space<vmem>>, vector<32x128xf32>,
    return
  }
  func.func @transform_0(%arg0: i32) -> (i32, i32) {
    %c0_i32 = arith.constant 0 : i32
    %c0_i32_0 = arith.constant 0 : i32
    return %arg0, %c0_i32 : i32, i32
  }
  func.func @transform_1(%arg0: i32) -> (i32, i32) {
    %c0_i32 = arith.constant 0 : i32
    %c0_i32_0 = arith.constant 0 : i32
    %c0_i32_1 = arith.constant 0 : i32
    return %c0_i32, %c0_i32_0 : i32, i32
  }
  func.func @transform_2(%arg0: i32) -> (i32, i32) {
    %c0_i32 = arith.constant 0 : i32
    %c0_i32_0 = arith.constant 0 : i32
    %c0_i32_1 = arith.constant 0 : i32
    return %c0_i32, %c0_i32_0 : i32, i32
  }
  func.func @transform_3(%arg0: i32) -> (i32, i32) {
    %c0_i32 = arith.constant 0 : i32
    %c0_i32_0 = arith.constant 0 : i32
    %c0_i32_1 = arith.constant 0 : i32
    return %c0_i32, %c0_i32_0 : i32, i32
  }
  func.func @transform_4(%arg0: i32) -> (i32, i32) {
    %c0_i32 = arith.constant 0 : i32
    %c0_i32_0 = arith.constant 0 : i32
    %c0_i32_1 = arith.constant 0 : i32
    return %c0_i32, %c0_i32_0 : i32, i32
  }
  func.func @transform_5(%arg0: i32) -> (i32, i32) {
    %c0_i32 = arith.constant 0 : i32
    %c0_i32_0 = arith.constant 0 : i32
    %c0_i32_1 = arith.constant 0 : i32
    return %c0_i32, %c0_i32_0 : i32, i32
  }
  func.func @transform_6(%arg0: i32) -> (i32, i32, i32) {
    %c0_i32 = arith.constant 0 : i32
    %c0_i32_0 = arith.constant 0 : i32
    %c0_i32_1 = arith.constant 0 : i32
    %c0_i32_2 = arith.constant 0 : i32
    return %c0_i32, %c0_i32_0, %c0_i32_1 : i32, i32, i32
  }
  func.func @transform_7(%arg0: i32) -> (i32, i32) {
    %c0_i32 = arith.constant 0 : i32
    %c0_i32_0 = arith.constant 0 : i32
    return %arg0, %c0_i32 : i32, i32
  }
}

</mosaic_0001>

<bundles_post_ra>
// kernel: tpu_custom_call.1
= control target key start
LH: loop header
LB: loop body
LE: loop exit
PB: predicated region body
PF: predicated region fallthrough
CT: control target
= control target key end

     0   :  { %12 = vsyncpa [#allocation3], 0  ;;  %s2862_s0 = inlined_call_operand.hbm [shape: bf16[64,128], index: 0, kind: input, shape index: {}]   ;;  %s2863_s1 = inlined_call_operand.hbm [shape: bf16[128,128], index: 1, kind: input, shape index: {}]   ;;  %s2864_s2 = inlined_call_operand.vmem [shape: f32[1,128], index: 2, kind: input, shape index: {}]   ;;  %s2865_s3 = inlined_call_operand.hbm [shape: bf16[128,128], index: 3, kind: input, shape index: {}]   ;;  %s2866_s4 = inlined_call_operand.vmem [shape: f32[1,128], index: 4, kind: input, shape index: {}]   ;;  %s2867_s5 = inlined_call_operand.hbm [shape: bf16[128,128], index: 5, kind: input, shape index: {}]   ;;  %s2868_s6 = inlined_call_operand.hbm [shape: bf16[4,128,128], index: 6, kind: input, shape index: {}]   ;;  %s2869_s7 = inlined_call_operand.hbm [shape: f32[64,128], index: 7, kind: output, shape index: {}]  }
   0x1   :  { %14 = vsyncpa [#allocation3 + $0x1], 0 }
   0x2   :  { %15 = vsyncpa [#allocation6], 0 }
   0x3   :  { %16 = vsyncpa [#allocation9], 0 }
   0x4   :  { %17 = vsyncpa [#allocation4], 0 }
   0x5   :  { %19 = vsyncpa [#allocation4 + $0x1], 0  ;;  %s2371_s24 = smov 0   ;;  %s2373_s25 = smov 0  }
   0x6   :  { %s2375_s26 = smov 0   ;;  %s2377_s27 = smov 0  }
   0x7 LB: > { %s2392_s28 = sadd.s32 4294967295, %s2318_s27   ;;  %s1552_s29 = sadd.s32 4294967294, %s2318_s27   ;;  %s2318_s27 = sphi %s2377_s27, %s2909_s27   ;;  %s2314_s26 = sphi %s2375_s26, %s2908_s26   ;;  %s2310_s25 = sphi %s2373_s25, %s2907_s25   ;;  %s2306_s24 = sphi %s2371_s24, %s2906_s24  }
   0x8   : > { %p45_p0 = scmp.ne.s32.totalorder %s2310_s25, %s2306_s24  ;;  %p2870_p1 = scmp.eq.s32.totalorder %s2392_s28, 0 }
   0x9   : > { %p201_p3 = scmp.eq.s32.totalorder %s1552_s29, 1  ;;  %p1553_p5 = scmp.ge.s32.totalorder %s2318_s27, 1 }
   0xa   : > { %p2401_p4 = por %p2870_p1, %p45_p0  ;;  %p208_p7 = scmp.lt.s32.totalorder %s2318_s27, 3 }
   0xb   : > { %p2406_p6 = por %p201_p3, %p45_p0  ;;  %s2320_s10 = smov [#allocation5]  }
   0xc   : > { %s2874_s30 = scalar_select %p2401_p4, 1, 0 }
   0xd   : > { %s2875_s8 = scalar_select %p2406_p6, 1, 0 }
   0xe   : > { %p2411_p8 = pnand %p1553_p5, %p208_p7  ;;  %s220_s11 = sshll.u32 %s2320_s10, 4  ;;  %s2415_s11 = int_to_ptr.vmem [resolvable:$true] %s220_s11 }
   0xf   : > { %2876 = sst [smem:[#allocation16_spill]] %s2875_s8  ;;  %s2321_s13 = smov [#allocation8]  }
  0x10   : > { %s2877_s9 = scalar_select %p2411_p8, 1, 0 }
  0x11   : > { %p1932_p9 = pneg %p2411_p8  ;;  %s252_s14 = sshll.u32 %s2321_s13, 4  ;;  %s2426_s14 = int_to_ptr.vmem [resolvable:$true] %s252_s14 }
  0x12   : > { %s2322_s15 = smov [#allocation7]   ;;  %s2102_s19 = scalar_lea.hbm %s2863_s1, 1024 }
  0x13   : > { %p2422_p11 = pnand %p1932_p9, %p2870_p1  ;;  %s2428_s16 = sshll.u32 %s2322_s15, 4  ;;  %s237_s16 = int_to_ptr.vmem [resolvable:$true] %s2428_s16 }
  0x14   : > { %p2103_p12 = scmp.ne.s32.totalorder %s2863_s1, %s2102_s19  ;;  %p2109_p5 = scmp.lt.u32.totalorder %s2102_s19, %s2863_s1 }
  0x15   : > { %p2438_p13 = pneg %p2422_p11 }
  0x17   : > { %p2105_p0 = pnand %p2438_p13, %p2103_p12 }
  0x19   : > { %p2106_p3 = pneg %p2105_p0 }
  0x1b   : > { %p2111_p7 = pnand %p2109_p5, %p2106_p3 }
  0x1d   : > { %2114 = shalt.err (!%p2111_p7)
}
  0x1e   : > { %s2115_s10 = scalar_lea.vmem %s2415_s11, 1024  ;;  %p2123_p2 = scmp.lt.s32.totalorder %s2415_s11, %s2415_s11 }
  0x1f   : > { %p2116_p9 = scmp.ne.s32.totalorder %s2415_s11, %s2115_s10  ;;  %p2124_p6 = scmp.lt.s32.totalorder %s2115_s10, %s2115_s10 }
  0x21   : > { %p2118_p10 = pnand %p2116_p9, %p2438_p13  ;;  %p2125_p12 = por %p2124_p6, %p2123_p2 }
  0x23   : > { %p2119_p1 = pneg %p2118_p10 }
  0x25   : > { %p2126_p0 = pnand %p2125_p12, %p2119_p1 }
  0x27   : > { %2129 = shalt.err (!%p2126_p0)
}
  0x28   : > { %s2323_s13 = smov 64   ;;  %s2324_s15 = smov 4  }
  0x29   : > { %1935 = dma.hbm_to_vmem [thread:$0]  (!%p2422_p11), %s2863_s1, 1024, %s2415_s11, [#allocation6], %s2323_s13, %s2323_s13, %s2324_s15  }
  0x2a   : > { %s2130_s21 = scalar_lea.hbm %s2867_s5, 1024 }
  0x2b   : > { %p2131_p1 = scmp.ne.s32.totalorder %s2867_s5, %s2130_s21  ;;  %p2137_p10 = scmp.lt.u32.totalorder %s2130_s21, %s2867_s5 }
  0x2d   : > { %p2133_p2 = pnand %p2131_p1, %p2438_p13 }
  0x2f   : > { %p2134_p6 = pneg %p2133_p2 }
  0x31   : > { %p2139_p3 = pnand %p2137_p10, %p2134_p6 }
  0x33   : > { %2142 = shalt.err (!%p2139_p3)
}
  0x34   : > { %s2143_s11 = scalar_lea.vmem %s2426_s14, 1024  ;;  %p2151_p12 = scmp.lt.s32.totalorder %s2426_s14, %s2426_s14 }
  0x35   : > { %p2144_p5 = scmp.ne.s32.totalorder %s2426_s14, %s2143_s11  ;;  %p2152_p0 = scmp.lt.s32.totalorder %s2143_s11, %s2143_s11 }
  0x37   : > { %p2146_p7 = pnand %p2144_p5, %p2438_p13  ;;  %p2153_p1 = por %p2152_p0, %p2151_p12 }
  0x39   : > { %p2147_p9 = pneg %p2146_p7 }
  0x3b   : > { %p2154_p2 = pnand %p2153_p1, %p2147_p9 }
  0x3d   : > { %2157 = shalt.err (!%p2154_p2)
}
  0x3e   : > { %1941 = dma.hbm_to_vmem [thread:$0]  (!%p2422_p11), %s2867_s5, 1024, %s2426_s14, [#allocation9], %s2323_s13, %s2323_s13, %s2324_s15  }
  0x3f   : > { %s2158_s20 = scalar_lea.hbm %s2865_s3, 1024 }
  0x40   : > { %p2159_p6 = scmp.ne.s32.totalorder %s2865_s3, %s2158_s20  ;;  %p2165_p5 = scmp.lt.u32.totalorder %s2158_s20, %s2865_s3 }
  0x42   : > { %p2161_p10 = pnand %p2159_p6, %p2438_p13 }
  0x44   : > { %p2162_p3 = pneg %p2161_p10 }
  0x46   : > { %p2167_p7 = pnand %p2165_p5, %p2162_p3 }
  0x48   : > { %2170 = shalt.err (!%p2167_p7)
}
  0x49   : > { %s2171_s11 = scalar_lea.vmem %s237_s16, 1024  ;;  %p2179_p1 = scmp.lt.s32.totalorder %s237_s16, %s237_s16 }
  0x4a   : > { %p2172_p9 = scmp.ne.s32.totalorder %s237_s16, %s2171_s11  ;;  %p2180_p2 = scmp.lt.s32.totalorder %s2171_s11, %s2171_s11 }
  0x4c   : > { %p2174_p12 = pnand %p2172_p9, %p2438_p13  ;;  %p2181_p4 = por %p2180_p2, %p2179_p1 }
  0x4e   : > { %p2175_p0 = pneg %p2174_p12 }
  0x50   : > { %p2182_p8 = pnand %p2181_p4, %p2175_p0 }
  0x52   : > { %2185 = shalt.err (!%p2182_p8)
}
  0x53   : > { %1938 = dma.hbm_to_vmem [thread:$0]  (!%p2422_p11), %s2865_s3, 1024, %s237_s16, [#allocation6], %s2323_s13, %s2323_s13, %s2324_s15  }
  0x54   : > { %s2325_s17 = smov [#allocation10]   ;;  %s2186_s21 = scalar_lea.hbm %s2868_s6, 4096 }
  0x55   : > { %s265_s18 = sshll.u32 %s2325_s17, 4  ;;  %p2187_p4 = scmp.ne.s32.totalorder %s2868_s6, %s2186_s21  ;;  %s266_s18 = int_to_ptr.vmem [resolvable:$true] %s265_s18 }
  0x56   : > { %p2193_p10 = scmp.lt.u32.totalorder %s2186_s21, %s2868_s6 }
  0x57   : > { %p2189_p8 = pnand %p2187_p4, %p2438_p13 }
  0x59   : > { %p2190_p6 = pneg %p2189_p8 }
  0x5b   : > { %p2195_p3 = pnand %p2193_p10, %p2190_p6 }
  0x5d   : > { %2198 = shalt.err (!%p2195_p3)
}
  0x5e   : > { %s2199_s16 = scalar_lea.vmem %s266_s18, 4096  ;;  %p2207_p12 = scmp.lt.s32.totalorder %s266_s18, %s266_s18 }
  0x5f   : > { %p2200_p5 = scmp.ne.s32.totalorder %s266_s18, %s2199_s16  ;;  %p2208_p0 = scmp.lt.s32.totalorder %s2199_s16, %s2199_s16 }
  0x61   : > { %p2202_p7 = pnand %p2200_p5, %p2438_p13  ;;  %p2209_p1 = por %p2208_p0, %p2207_p12 }
  0x63   : > { %p2203_p9 = pneg %p2202_p7 }
  0x65   : > { %p2210_p2 = pnand %p2209_p1, %p2203_p9 }
  0x67   : > { %2213 = shalt.err (!%p2210_p2)
}
  0x68   : > { %1944 = dma.hbm_to_vmem [thread:$0]  (!%p2422_p11), %s2868_s6, 4096, %s266_s18, [#allocation9], %s2323_s13, %s2323_s13, %s2324_s15  }
  0x69   : > { %s2532_s22 = sadd.s32 1, %s2318_s27   ;;  %s32_s12 = sadd.s32 1, %s2314_s26 }
  0x6a   : > { %s29_s17 = ssub.s32 %s2318_s27, %s2532_s22  ;;  %p39_p13 = scmp.ne.s32.totalorder %s2314_s26, %s2310_s25 }
  0x6b   : > { %p30_p4 = scmp.eq.s32.totalorder %s29_s17, 0  ;;  %p40_p8 = scmp.eq.s32.totalorder %s2318_s27, 0 }
  0x6c   : > { %p2880_p6 = scmp.eq.s32.totalorder %s2392_s28, 1  ;;  %p1957_p3 = scmp.lt.s32.totalorder %s2318_s27, 2 }
  0x6d   : > { %s2548_s20 = scalar_select %p30_p4, %s2314_s26, %s32_s12  }
  0x6e   : > { %p2542_p10 = por %p2880_p6, %p39_p13  ;;  %p41_p5 = por %p40_p8, %p39_p13 }
  0x6f   : > { %s279_s21 = sand.u32 1, %s2314_s26   ;;  %s1658_s18 = sshll.u32 %s2318_s27, 8 }
  0x70   : > { %s1559_s23 = sshll.u32 %s279_s21, 4  ;;  %s2555_s11 = scalar_lea.hbm %s2862_s0, %s1658_s18 }
  0x71   : > { %s283_s16 = scalar_lea.vmem [#allocation2], %s1559_s23  ;;  %p2559_p11 = pnand %p1957_p3, %p41_p5 }
  0x72   : > { %s290_s14 = sshll.u32 %s283_s16, 4  ;;  %s2563_s12 = scalar_lea.sflag [#allocation3], %s279_s21  ;;  %s2557_s14 = int_to_ptr.vmem [resolvable:$true] %s290_s14 }
  0x73   : > { %s2214_s17 = scalar_lea.hbm %s2555_s11, 256  ;;  %p2216_p9 = pneg %p2559_p11 }
  0x74   : > { %p2215_p7 = scmp.ne.s32.totalorder %s2555_s11, %s2214_s17  ;;  %s2219_s29 = scalar_lea.hbm %s2862_s0, 512 }
  0x75   : > { %p2220_p1 = scmp.lt.u32.totalorder %s2555_s11, %s2862_s0  ;;  %p2221_p2 = scmp.lt.u32.totalorder %s2219_s29, %s2214_s17 }
  0x76   : > { %p2217_p12 = pnand %p2216_p9, %p2215_p7  ;;  %p2223_p4 = scmp.lt.u32.totalorder %s2214_s17, %s2555_s11 }
  0x77   : > { %p2222_p13 = por %p2221_p2, %p2220_p1 }
  0x78   : > { %p2218_p0 = pneg %p2217_p12 }
  0x79   : > { %p2224_p8 = por %p2223_p4, %p2222_p13 }
  0x7b   : > { %p2225_p6 = pnand %p2224_p8, %p2218_p0 }
  0x7d   : > { %2228 = shalt.err (!%p2225_p6)
}
  0x7e   : > { %s2229_s21 = scalar_lea.vmem %s2557_s14, 256  ;;  %s2326_s23 = smov [#allocation2]  }
  0x7f   : > { %p2230_p3 = scmp.ne.s32.totalorder %s2557_s14, %s2229_s21  ;;  %s2234_s18 = sshll.u32 %s2326_s23, 4  ;;  %s2235_s18 = int_to_ptr.vmem [resolvable:$false] %s2234_s18 }
  0x80   : > { %s2236_s10 = scalar_lea.vmem %s2235_s18, 512  ;;  %p2237_p12 = scmp.lt.s32.totalorder %s2557_s14, %s2235_s18 }
  0x81   : > { %p2232_p5 = pnand %p2230_p3, %p2216_p9  ;;  %p2238_p1 = scmp.lt.s32.totalorder %s2236_s10, %s2229_s21 }
  0x83   : > { %p2233_p7 = pneg %p2232_p5  ;;  %p2239_p2 = por %p2238_p1, %p2237_p12 }
  0x85   : > { %p2240_p13 = pnand %p2239_p2, %p2233_p7 }
  0x87   : > { %2243 = shalt.err (!%p2240_p13)
}
  0x88   : > { %1948 = dma.hbm_to_vmem [thread:$0]  (!%p2559_p11), %s2555_s11, 256, %s2557_s14, %s2563_s12, %s2323_s13, %s2323_s13, %s2324_s15  }
  0x89   : > { %p2883_p9 = scmp.ne.s32.totalorder %s2877_s9, 0 }
  0x8a   : > { %s2597_s17 = sand.u32 (!%p2883_p9), 1, %s2310_s25   ;;  %p2884_p0 = scmp.ne.s32.totalorder (!%p2883_p9), %s2874_s30, 0 }
  0x8b   : > { %302 = sbr.rel (%p2883_p9) target bundleno = 1602 (0x642), region = 48  ;;  %s1563_s29 = sshll.u32 (!%p2883_p9), %s2597_s17, 4 }
  0x8c   : > { %s305_s16 = scalar_lea.sflag (!%p2883_p9), [#allocation3], %s2597_s17  ;;  %s2601_s21 = scalar_lea.vmem (!%p2883_p9), [#allocation2], %s1563_s29 }
  0x92   : > { %2289 = dma.done.wait (%p2884_p0), %s305_s16, 256  }
  0x93   : > { %2291 = vsyncadd (%p2884_p0), %s305_s16, 4294967040  ;;  %p2885_p11 = scmp.eq.s32.totalorder %s2392_s28, 0 }
  0x95   : > { %2293 = dma.done.wait (%p2885_p11), [#allocation6], 2048   ;;  %p2886_p4 = pmov %p2885_p11 }
  0x97   : > { %2295 = vsyncadd (%p2886_p4), [#allocation6], 4294965248  ;;  %p2887_p8 = pmov %p2886_p4 }
  0x98   : > { %p2888_p6 = pmov %p2886_p4 }
  0x99   : > { %2297 = dma.done.wait (%p2887_p8), [#allocation9], 5120  }
  0x9a   : > { %2299 = vsyncadd (%p2888_p6), [#allocation9], 4294962176  ;;  %v2004_v0 = vld [vmem:[#allocation5] sm:$0xff]   ;;  %v2005_v1 = vld [vmem:[#allocation5 + $0x8] sm:$0xff]   ;;  %s1568_s11 = sshll.u32 %s2597_s17, 5  ;;  %s1659_s12 = sshll.u32 %s2392_s28, 9 }
  0x9b   : > { %1740 = vmatprep.subr.bf16.mxu0 %v2004_v0  ;;  %v2006_v2 = vld [vmem:[#allocation5 + $0x10] sm:$0xff]   ;;  %v2007_v3 = vld [vmem:[#allocation5 + $0x18] sm:$0xff]   ;;  %v2008_v7 = vld [vmem:[#allocation5 + $0x20] sm:$0xff]   ;;  %s354_s14 = scalar_lea.vmem [#allocation11], %s1568_s11  ;;  %s2809_s18 = scalar_lea.hbm %s2869_s7, %s1659_s12 }
  0x9c   : > { %1741 = vmatpush3.bf16.msra.mxu0 %v2004_v0  ;;  %v2616_v4 = vld [vmem:[%s2601_s21] sm:$0xf]  ;;  %v2619_v5 = vld [vmem:[%s2601_s21 + $0x4] sm:$0xf]  ;;  %v2009_v8 = vld [vmem:[#allocation5 + $0x28] sm:$0xff]   ;;  %s1441_s8 = sshll.u32 %s354_s14, 4  ;;  %s2811_s8 = int_to_ptr.vmem [resolvable:$true] %s1441_s8 }
  0x9d   : > { %1742 = vmatprep.subr.bf16.mxu0 %v2005_v1  ;;  %v1570_v6 = vcombine.low %v2616_v4, %v2619_v5  ;;  %v2010_v9 = vld [vmem:[#allocation5 + $0x30] sm:$0xff]   ;;  %v2011_v10 = vld [vmem:[#allocation5 + $0x38] sm:$0xff]   ;;  %v2014_v13 = vld [vmem:[#allocation7] sm:$0xff]   ;;  %vm826_vm0 = vcmp.eq.bf16.partialorder %v2616_v4, 1065369472  ;;  %vm788_vm4 = vcmp.eq.bf16.partialorder %v2616_v4, 0 }
  0x9e   : > { %v2624_v11 = vld [vmem:[%s2601_s21 + $0x8] sm:$0xf]  ;;  %v2627_v12 = vld [vmem:[%s2601_s21 + $0xc] sm:$0xf]  ;;  %v2016_v16 = vld [vmem:[#allocation7 + $0x10] sm:$0xff]   ;;  %vm789_vm5 = vcmp.eq.bf16.partialorder %v2619_v5, 0 }
  0x9f   : > { %1756 = vmatprep.mubr.bf16.mxu0 %v1570_v6  ;;  %v1571_v14 = vcombine.low %v2624_v11, %v2627_v12  ;;  %v2015_v15 = vld [vmem:[#allocation7 + $0x8] sm:$0xff]   ;;  %v2017_v17 = vld [vmem:[#allocation7 + $0x18] sm:$0xff]   ;;  %v2018_v18 = vld [vmem:[#allocation7 + $0x20] sm:$0xff]   ;;  %vm827_vm1 = vcmp.eq.bf16.partialorder %v2619_v5, 1065369472  ;;  %vm790_vm15 = vcmp.eq.bf16.partialorder %v2624_v11, 0 }
  0xa0   : > { %1743 = vmatpush3.bf16.msra.mxu0 %v2005_v1  ;;  %v2019_v19 = vld [vmem:[#allocation7 + $0x28] sm:$0xff]   ;;  %v2020_v20 = vld [vmem:[#allocation7 + $0x30] sm:$0xff]   ;;  %v2021_v21 = vld [vmem:[#allocation7 + $0x38] sm:$0xff]   ;;  %vm828_vm2 = vcmp.eq.bf16.partialorder %v2624_v11, 1065369472  ;;  %s1428_s10 = scalar_lea.sflag [#allocation4], %s2597_s17 }
  0xa1   : > { %1744 = vmatprep.subr.bf16.mxu0 %v2006_v2  ;;  %v1569_v22 = vld [vmem:[%s2864_s2] ss:$0 sm:$0xff]  ;;  %v2636_v38 = vld [vmem:[#allocation8 + $0x8] sm:$0xff]   ;;  %v2641_v39 = vld [vmem:[#allocation8 + $0x10] sm:$0xff]   ;;  %vm829_vm3 = vcmp.eq.bf16.partialorder %v2627_v12, 1065369472 }
  0xa2   : > { %v2634_v37 = vld [vmem:[#allocation8] sm:$0xff]   ;;  %v2025_v49 = vld [vmem:[#allocation8 + $0x18] sm:$0xff]   ;;  %v2027_v51 = vld [vmem:[#allocation8 + $0x28] sm:$0xff]   ;;  %s2244_s29 = scalar_lea.vmem %s2811_s8, 512  ;;  %s2328_s16 = smov [#allocation11]  }
  0xa3   : > { %v1580_v40 = vld [vmem:[%s2866_s4] ss:$0 sm:$0xff]  ;;  %v2028_v52 = vld [vmem:[#allocation8 + $0x30] sm:$0xff]   ;;  %v2029_v53 = vld [vmem:[#allocation8 + $0x38] sm:$0xff]   ;;  %p2245_p3 = scmp.ne.s32.totalorder %s2811_s8, %s2244_s29  ;;  %s2248_s21 = sshll.u32 %s2328_s16, 4  ;;  %s2249_s21 = int_to_ptr.vmem [resolvable:$false] %s2248_s21 }
  0xa4   : > { %1745 = vmatpush3.bf16.msra.mxu0 %v2006_v2  ;;  %v2026_v50 = vld [vmem:[#allocation8 + $0x20] sm:$0xff]   ;;  %v2031_v55 = vld [vmem:[#allocation10 + $0x48] sm:$0xff]   ;;  %v2032_v56 = vld [vmem:[#allocation10 + $0x50] sm:$0xff]   ;;  %s2250_s30 = scalar_lea.vmem %s2249_s21, 1024  ;;  %p2251_p12 = scmp.lt.s32.totalorder %s2811_s8, %s2249_s21 }
  0xa5   : > { %1746 = vmatprep.subr.bf16.mxu0 %v2007_v3  ;;  %v2030_v54 = vld [vmem:[#allocation10 + $0x40] sm:$0xff]   ;;  %v2033_v57 = vld [vmem:[#allocation10 + $0x58] sm:$0xff]   ;;  %p2246_p5 = pnand %p2245_p3, %p2542_p10  ;;  %p2252_p1 = scmp.lt.s32.totalorder %s2250_s30, %s2244_s29 }
  0xa6   : > { %1800 = vmatprep.subr.bf16.mxu1 %v2030_v54 }
  0xa7   : > { %1801 = vmatpush3.bf16.msra.mxu1 %v2030_v54  ;;  %v2043_v54 = vld [vmem:[#allocation10 + $0x28] sm:$0xff]   ;;  %p2247_p7 = pneg %p2246_p5  ;;  %p2253_p2 = por %p2252_p1, %p2251_p12 }
  0xa8   : > { %1747 = vmatpush3.bf16.msra.mxu0 %v2007_v3  ;;  %1802 = vmatprep.subr.bf16.mxu1 %v2031_v55 }
  0xa9   : > { %1748 = vmatprep.subr.bf16.mxu0 %v2008_v7  ;;  %p2254_p13 = pnand %p2253_p2, %p2247_p7 }
  0xab   : > { %1803 = vmatpush3.bf16.msra.mxu1 %v2031_v55  ;;  %v2044_v55 = vld [vmem:[#allocation10 + $0x30] sm:$0xff]  }
  0xac   : > { %1749 = vmatpush3.bf16.msra.mxu0 %v2008_v7  ;;  %1804 = vmatprep.subr.bf16.mxu1 %v2032_v56 }
  0xad   : > { %1750 = vmatprep.subr.bf16.mxu0 %v2009_v8 }
  0xaf   : > { %1805 = vmatpush3.bf16.msra.mxu1 %v2032_v56 }
  0xb0   : > { %1751 = vmatpush3.bf16.msra.mxu0 %v2009_v8  ;;  %1806 = vmatprep.subr.bf16.mxu1 %v2033_v57 }
  0xb1   : > { %1752 = vmatprep.subr.bf16.mxu0 %v2010_v9 }
  0xb3   : > { %1807 = vmatpush3.bf16.msra.mxu1 %v2033_v57 }
  0xb4   : > { %1753 = vmatpush3.bf16.msra.mxu0 %v2010_v9 }
  0xb5   : > { %1754 = vmatprep.subr.bf16.mxu0 %v2011_v10 }
  0xb8   : > { %1755 = vmatpush3.bf16.msra.mxu0 %v2011_v10 }
  0xb9   : > { %1760 = vmatprep.subr.bf16.mxu0 %v2014_v13 }
  0xbb   : > { %1757 = vmatmul.mubr.bf16.vlgmr.msra.gmra.mrb[0].mxu0 %v1571_v14 }
  0xbc   : > { %1761 = vmatpush3.bf16.msra.mxu0 %v2014_v13 }
  0xbd   : > { %1762 = vmatprep.subr.bf16.mxu0 %v2015_v15 }
  0xc0   : > { %1763 = vmatpush3.bf16.msra.mxu0 %v2015_v15 }
  0xc1   : > { %1764 = vmatprep.subr.bf16.mxu0 %v2016_v16 }
  0xc4   : > { %1765 = vmatpush3.bf16.msra.mxu0 %v2016_v16  ;;  %v2034_v16 = vld [vmem:[#allocation10 + $0x60] sm:$0xff]  }
  0xc5   : > { %1766 = vmatprep.subr.bf16.mxu0 %v2017_v17  ;;  %1808 = vmatprep.subr.bf16.mxu1 %v2034_v16 }
  0xc6   : > { %1809 = vmatpush3.bf16.msra.mxu1 %v2034_v16  ;;  %v2053_v16 = vld [vmem:[#allocation10 + $0xb8] sm:$0xff]  }
  0xc8   : > { %1767 = vmatpush3.bf16.msra.mxu0 %v2017_v17  ;;  %v2035_v17 = vld [vmem:[#allocation10 + $0x68] sm:$0xff]  }
  0xc9   : > { %1768 = vmatprep.subr.bf16.mxu0 %v2018_v18  ;;  %1810 = vmatprep.subr.bf16.mxu1 %v2035_v17 }
  0xca   : > { %1811 = vmatpush3.bf16.msra.mxu1 %v2035_v17 }
  0xcc   : > { %1769 = vmatpush3.bf16.msra.mxu0 %v2018_v18  ;;  %v2036_v18 = vld [vmem:[#allocation10 + $0x70] sm:$0xff]  }
  0xcd   : > { %1770 = vmatprep.subr.bf16.mxu0 %v2019_v19  ;;  %1812 = vmatprep.subr.bf16.mxu1 %v2036_v18 }
  0xce   : > { %1813 = vmatpush3.bf16.msra.mxu1 %v2036_v18 }
  0xd0   : > { %1771 = vmatpush3.bf16.msra.mxu0 %v2019_v19  ;;  %v2037_v19 = vld [vmem:[#allocation10 + $0x78] sm:$0xff]  }
  0xd1   : > { %1772 = vmatprep.subr.bf16.mxu0 %v2020_v20  ;;  %1814 = vmatprep.subr.bf16.mxu1 %v2037_v19 }
  0xd2   : > { %1815 = vmatpush3.bf16.msra.mxu1 %v2037_v19 }
  0xd4   : > { %1773 = vmatpush3.bf16.msra.mxu0 %v2020_v20  ;;  %v2038_v20 = vld [vmem:[#allocation10] sm:$0xff]  }
  0xd5   : > { %1774 = vmatprep.subr.bf16.mxu0 %v2021_v21  ;;  %1820 = vmatprep.subr.bf16.mxu1 %v2038_v20 }
  0xd8   : > { %1775 = vmatpush3.bf16.msra.mxu0 %v2021_v21 }
  0xd9   : > { %1780 = vmatprep.subr.bf16.mxu0 %v2634_v37 }
 0x18e   : > { %v1758_v23 = vpop.f32.mrb[0].mxu0 }
 0x18f   : > { %v493_v24 = vadd.f32 %v1758_v23, %v1569_v22  ;;  %v484_v25 = vpop.f32.mrb[1].mxu0 }
 0x190   : > { %v485_v26 = vadd.f32 %v1569_v22, %v484_v25  ;;  %v1759_v27 = vpop.f32.mrb[2].mxu0  ;;  %v2327_v25 = vmov 0  }
 0x191   : > { %2062 = vtanh.f32 %v493_v24  ;;  %v496_v28 = vadd.f32 %v1759_v27, %v1569_v22  ;;  %v487_v29 = vpop.f32.mrb[3].mxu0  ;;  %v831_v27 = vsel %vm827_vm1, 65537, %v2327_v25  ;;  %vm1059_vm1 = vcmp.eq.bf16.partialorder %v2616_v4, 1073758208 }
 0x192   : > { %2064 = vtanh.f32 %v485_v26  ;;  %v488_v30 = vadd.f32 %v1569_v22, %v487_v29  ;;  %v830_v26 = vsel %vm826_vm0, 65537, %v2327_v25  ;;  %v833_v29 = vsel %vm829_vm3, 65537, %v2327_v25 }
 0x193   : > { %2066 = vtanh.f32 %v496_v28  ;;  %v832_v28 = vsel %vm828_vm2, 65537, %v2327_v25  ;;  %vm791_vm0 = vcmp.eq.bf16.partialorder %v2627_v12, 0  ;;  %vm1060_vm2 = vcmp.eq.bf16.partialorder %v2619_v5, 1073758208 }
 0x194   : > { %2068 = vtanh.f32 %v488_v30  ;;  %v792_v30 = vsel %vm788_vm4, 65537, %v2327_v25  ;;  %v794_v56 = vsel %vm790_vm15, 65537, %v2327_v25  ;;  %v795_v57 = vsel %vm791_vm0, 65537, %v2327_v25 }
 0x19b   : > { %v2063_v31 = vpop.eup %2062 }
 0x19c   : > { %v2065_v32 = vpop.eup %2064 }
 0x19d   : > { %v2067_v33 = vpop.eup %2066 }
 0x19e   : > { %v2069_v34 = vpop.eup %2068  ;;  %v504_v35 = vpack.c.bf16 %v2067_v33, %v2063_v31  ;;  %v793_v31 = vsel %vm789_vm5, 65537, %v2327_v25  ;;  %v835_v33 = vunpack.c.l.b16 %v831_v27  ;;  %v2059_v27 = vld [vmem:[#allocation10 + $0xe8] sm:$0xff]  }
 0x19f   : > { %v503_v36 = vpack.c.bf16 %v2069_v34, %v2065_v32  ;;  %v834_v32 = vunpack.c.l.b16 %v830_v26  ;;  %v836_v34 = vunpack.c.l.b16 %v832_v28  ;;  %v2058_v26 = vld [vmem:[#allocation10 + $0xe0] sm:$0xff]   ;;  %v2060_v28 = vld [vmem:[#allocation10 + $0xf0] sm:$0xff]  }
 0x1a0   : > { %vm2683_vm7 = vcmp.ne.s32.totalorder %v835_v33, 0 }
 0x1a1   : > { %1776 = vmatprep.mubr.bf16.mxu0 %v503_v36  ;;  %vm2679_vm6 = vcmp.ne.s32.totalorder %v834_v32, 0  ;;  %vm840_vm8 = vcmp.ne.s32.totalorder %v836_v34, 0  ;;  %v1339_v34 = vlaneseq }
 0x1a2   : > { %1777 = vmatmul.mubr.bf16.vlgmr.msra.gmra.mrb[4].mxu0 %v504_v35  ;;  %v837_v35 = vunpack.c.l.b16 %v833_v29  ;;  %vm1605_vm12 = vmpackc.low %vm2683_vm7, %vm2679_vm6 }
 0x1a3   : > { %1781 = vmatpush3.bf16.msra.mxu0 %v2634_v37 }
 0x1a4   : > { %1782 = vmatprep.subr.bf16.mxu0 %v2636_v38  ;;  %vm841_vm9 = vcmp.ne.s32.totalorder %v837_v35, 0  ;;  %v1340_v35 = vand.u32 127, %v1339_v34 }
 0x1a5   : > { %vm1608_vm13 = vmpackc.low %vm841_vm9, %vm840_vm8  ;;  %vm1061_vm9 = vcmp.eq.bf16.partialorder %v2624_v11, 1073758208 }
 0x1a7   : > { %1783 = vmatpush3.bf16.msra.mxu0 %v2636_v38 }
 0x1a8   : > { %1784 = vmatprep.subr.bf16.mxu0 %v2641_v39 }
 0x1ab   : > { %1785 = vmatpush3.bf16.msra.mxu0 %v2641_v39 }
 0x1ac   : > { %1786 = vmatprep.subr.bf16.mxu0 %v2025_v49 }
 0x1af   : > { %1787 = vmatpush3.bf16.msra.mxu0 %v2025_v49 }
 0x1b0   : > { %1788 = vmatprep.subr.bf16.mxu0 %v2026_v50 }
 0x1b3   : > { %1789 = vmatpush3.bf16.msra.mxu0 %v2026_v50 }
 0x1b4   : > { %1790 = vmatprep.subr.bf16.mxu0 %v2027_v51 }
 0x1b7   : > { %1791 = vmatpush3.bf16.msra.mxu0 %v2027_v51 }
 0x1b8   : > { %1792 = vmatprep.subr.bf16.mxu0 %v2028_v52 }
 0x1bb   : > { %1793 = vmatpush3.bf16.msra.mxu0 %v2028_v52 }
 0x1bc   : > { %1794 = vmatprep.subr.bf16.mxu0 %v2029_v53 }
 0x1bf   : > { %1795 = vmatpush3.bf16.msra.mxu0 %v2029_v53 }
 0x1c0   : > { %1880 = vmatprep.subr.bf16.mxu0 %v2634_v37 }
 0x275   : > { %v1778_v41 = vpop.f32.mrb[4].mxu0 }
 0x276   : > { %v619_v42 = vadd.f32 %v1778_v41, %v1580_v40  ;;  %v610_v43 = vpop.f32.mrb[5].mxu0 }
 0x277   : > { %v611_v44 = vadd.f32 %v1580_v40, %v610_v43  ;;  %v1779_v45 = vpop.f32.mrb[6].mxu0 }
 0x278   : > { %629 = vmax.xlane.f32.xlu1 %v619_v42  ;;  %v613_v46 = vpop.f32.mrb[7].mxu0  ;;  %v622_v47 = vadd.f32 %v1779_v45, %v1580_v40 }
 0x279   : > { %625 = vmax.xlane.f32.xlu0 %v611_v44  ;;  %v614_v48 = vadd.f32 %v1580_v40, %v613_v46 }
 0x27c   : > { %631 = vmax.xlane.f32.xlu1 %v622_v47 }
 0x27d   : > { %627 = vmax.xlane.f32.xlu0 %v614_v48 }
 0x305   : > { %v630_v58 = vpop.xlane.xlu1 %629 }
 0x306   : > { %v626_v59 = vpop.xlane.xlu0 %625  ;;  %v635_v61 = vsub.f32 %v619_v42, %v630_v58  ;;  %v1063_v58 = vsel %vm1059_vm1, 65537, %v2327_v25 }
 0x307   : > { %v633_v60 = vsub.f32 %v611_v44, %v626_v59  ;;  %v1064_v59 = vsel %vm1060_vm2, 65537, %v2327_v25 }
 0x308   : > { %v641_v3 = vmul.f32 1.442695, %v635_v61  ;;  %v798_v61 = vunpack.c.l.b16 %v794_v56 }
 0x309   : > { %v637_v62 = vmul.f32 1.442695, %v633_v60  ;;  %v632_v63 = vpop.xlane.xlu1 %631  ;;  %v2045_v60 = vld [vmem:[#allocation10 + $0x38] sm:$0xff]  }
 0x30a   : > { %v636_v0 = vsub.f32 %v622_v47, %v632_v63  ;;  %v628_v1 = vpop.xlane.xlu0 %627  ;;  %v1067_v63 = vunpack.c.l.b16 %v1063_v58  ;;  %vm802_vm3 = vcmp.ne.s32.totalorder %v798_v61, 0 }
 0x30b   : > { %v634_v2 = vsub.f32 %v614_v48, %v628_v1  ;;  %2070 = vpow2.f32 %v637_v62  ;;  %v799_v62 = vunpack.c.l.b16 %v795_v57  ;;  %v2046_v1 = vld [vmem:[#allocation10 + $0x80] sm:$0xff]  }
 0x30c   : > { %v643_v6 = vmul.f32 1.442695, %v636_v0  ;;  %v1068_v0 = vunpack.c.l.b16 %v1064_v59  ;;  %vm1071_vm5 = vcmp.ne.s32.totalorder %v1067_v63, 0 }
 0x30d   : > { %v639_v7 = vmul.f32 1.442695, %v634_v2  ;;  %vm803_vm4 = vcmp.ne.s32.totalorder %v799_v62, 0  ;;  %v2047_v2 = vld [vmem:[#allocation10 + $0x88] sm:$0xff]  }
 0x30e   : > { %2072 = vpow2.f32 %v643_v6  ;;  %vm1072_vm6 = vcmp.ne.s32.totalorder %v1068_v0, 0  ;;  %vm1622_vm7 = vmpackc.low %vm803_vm4, %vm802_vm3  ;;  %v2049_v6 = vld [vmem:[#allocation10 + $0x98] sm:$0xff]   ;;  %vm1201_vm3 = vcmp.eq.bf16.partialorder %v2624_v11, 1077952576  ;;  %vm1202_vm4 = vcmp.eq.bf16.partialorder %v2627_v12, 1077952576 }
 0x30f   : > { %2074 = vpow2.f32 %v639_v7  ;;  %vm1633_vm8 = vmpackc.low %vm1072_vm6, %vm1071_vm5  ;;  %v2050_v7 = vld [vmem:[#allocation10 + $0xa0] sm:$0xff]   ;;  %v1205_v29 = vsel %vm1201_vm3, 65537, %v2327_v25 }
 0x310   : > { %2076 = vpow2.f32 %v641_v3  ;;  %v2048_v3 = vld [vmem:[#allocation10 + $0x90] sm:$0xff]   ;;  %v1209_v32 = vunpack.c.l.b16 %v1205_v29 }
 0x312   : > { %vm1213_vm5 = vcmp.ne.s32.totalorder %v1209_v32, 0 }
 0x315   : > { %v2650_v8 = vpop.eup %2070 }
 0x318   : > { %v2652_v9 = vpop.eup %2072 }
 0x319   : > { %v2654_v10 = vpop.eup %2074 }
 0x31a   : > { %v2656_v13 = vpop.eup %2076  ;;  %v661_v14 = vpack.c.bf16 %v2654_v10, %v2650_v8 }
 0x31b   : > { %v662_v15 = vpack.c.bf16 %v2652_v9, %v2656_v13 }
 0x31c   : > { %1796 = vmatprep.mubr.bf16.mxu0 %v661_v14 }
 0x31d   : > { %1797 = vmatmul.mubr.bf16.vlgmr.msra.gmra.mrb[8].mxu0 %v662_v15 }
 0x31e   : > { %1881 = vmatpush3.bf16.msra.mxu0 %v2634_v37  ;;  %v796_v37 = vunpack.c.l.b16 %v792_v30  ;;  %v1206_v30 = vsel %vm1202_vm4, 65537, %v2327_v25 }
 0x31f   : > { %1882 = vmatprep.subr.bf16.mxu0 %v2636_v38  ;;  %v1210_v33 = vunpack.c.l.b16 %v1206_v30 }
 0x320   : > { %vm800_vm10 = vcmp.ne.s32.totalorder %v796_v37, 0 }
 0x321   : > { %vm1214_vm6 = vcmp.ne.s32.totalorder %v1210_v33, 0 }
 0x322   : > { %1883 = vmatpush3.bf16.msra.mxu0 %v2636_v38  ;;  %v797_v38 = vunpack.c.l.b16 %v793_v31  ;;  %v2061_v31 = vld [vmem:[#allocation10 + $0xf8] sm:$0xff]  }
 0x323   : > { %1884 = vmatprep.subr.bf16.mxu0 %v2641_v39 }
 0x324   : > { %vm801_vm11 = vcmp.ne.s32.totalorder %v797_v38, 0 }
 0x325   : > { %vm1619_vm14 = vmpackc.low %vm801_vm11, %vm800_vm10  ;;  %vm1062_vm10 = vcmp.eq.bf16.partialorder %v2627_v12, 1073758208  ;;  %vm1199_vm11 = vcmp.eq.bf16.partialorder %v2616_v4, 1077952576 }
 0x326   : > { %1885 = vmatpush3.bf16.msra.mxu0 %v2641_v39  ;;  %v1203_v14 = vsel %vm1199_vm11, 65537, %v2327_v25  ;;  %vm770_vm11 = vcmp.ge.bf16.partialorder %v2624_v11, 0 }
 0x327   : > { %1886 = vmatprep.subr.bf16.mxu0 %v2025_v49  ;;  %v1207_v19 = vunpack.c.l.b16 %v1203_v14  ;;  %v774_v63 = vsel %vm770_vm11, 65537, %v2327_v25 }
 0x329   : > { %vm1211_vm15 = vcmp.ne.s32.totalorder %v1207_v19, 0 }
 0x32a   : > { %1887 = vmatpush3.bf16.msra.mxu0 %v2025_v49 }
 0x32b   : > { %1888 = vmatprep.subr.bf16.mxu0 %v2026_v50 }
 0x32e   : > { %1889 = vmatpush3.bf16.msra.mxu0 %v2026_v50  ;;  %v2039_v50 = vld [vmem:[#allocation10 + $0x8] sm:$0xff]  }
 0x32f   : > { %1890 = vmatprep.subr.bf16.mxu0 %v2027_v51 }
 0x332   : > { %1891 = vmatpush3.bf16.msra.mxu0 %v2027_v51  ;;  %v2040_v51 = vld [vmem:[#allocation10 + $0x10] sm:$0xff]  }
 0x333   : > { %1892 = vmatprep.subr.bf16.mxu0 %v2028_v52 }
 0x336   : > { %1893 = vmatpush3.bf16.msra.mxu0 %v2028_v52  ;;  %v2041_v52 = vld [vmem:[#allocation10 + $0x18] sm:$0xff]  }
 0x337   : > { %1894 = vmatprep.subr.bf16.mxu0 %v2029_v53 }
 0x33a   : > { %1895 = vmatpush3.bf16.msra.mxu0 %v2029_v53  ;;  %v2042_v53 = vld [vmem:[#allocation10 + $0x20] sm:$0xff]  }
 0x3f0   : > { %v1798_v21 = vpop.f32.mrb[8].mxu0 }
 0x3f1   : > { %2078 = vrcp.f32 %v1798_v21  ;;  %v745_v22 = vpop.f32.mrb[9].mxu0  ;;  %v2054_v21 = vld [vmem:[#allocation10 + $0xc0] sm:$0xff]  }
 0x3f2   : > { %2080 = vrcp.f32 %v745_v22  ;;  %v1799_v23 = vpop.f32.mrb[10].mxu0  ;;  %v2055_v22 = vld [vmem:[#allocation10 + $0xc8] sm:$0xff]  }
 0x3f3   : > { %2082 = vrcp.f32 %v1799_v23  ;;  %v748_v24 = vpop.f32.mrb[11].mxu0  ;;  %v2056_v23 = vld [vmem:[#allocation10 + $0xd0] sm:$0xff]  }
 0x3f4   : > { %2084 = vrcp.f32 %v748_v24  ;;  %v2057_v24 = vld [vmem:[#allocation10 + $0xd8] sm:$0xff]  }
 0x3fb   : > { %v2079_v36 = vpop.eup %2078 }
 0x3fc   : > { %v2081_v39 = vpop.eup %2080  ;;  %v2688_v44 = vmul.f32 %v2079_v36, %v2656_v13  ;;  %v1066_v13 = vsel %vm1062_vm10, 65537, %v2327_v25 }
 0x3fd   : > { %v2083_v40 = vpop.eup %2082  ;;  %v2694_v46 = vmul.f32 %v2081_v39, %v2650_v8  ;;  %v2051_v8 = vld [vmem:[#allocation10 + $0xa8] sm:$0xff]   ;;  %v1070_v18 = vunpack.c.l.b16 %v1066_v13 }
 0x3fe   : > { %v2085_v43 = vpop.eup %2084  ;;  %v2691_v45 = vmul.f32 %v2083_v40, %v2652_v9  ;;  %v2052_v9 = vld [vmem:[#allocation10 + $0xb0] sm:$0xff]  }
 0x3ff   : > { %v2697_v47 = vmul.f32 %v2085_v43, %v2654_v10  ;;  %v1065_v10 = vsel %vm1061_vm9, 65537, %v2327_v25  ;;  %vm1342_vm9 = vcmp.lt.s32.totalorder %v1340_v35, 12 }
 0x400   : > { %v2705_v48 = vpack.c.bf16 %v2691_v45, %v2688_v44  ;;  %v1069_v17 = vunpack.c.l.b16 %v1065_v10 }
 0x401   : > { %v2709_v49 = vpack.c.bf16 %v2697_v47, %v2694_v46 }
 0x403   : > { %1816 = vmatprep.mubr.msk.bf16.mxu1 %vm1605_vm12, %v2709_v49  ;;  %vm1200_vm12 = vcmp.eq.bf16.partialorder %v2619_v5, 1077952576 }
 0x404   : > { %1817 = vmatmul.mubr.msk.bf16.vlgmr.msra.gmra.mrb[0].mxu1 %vm1608_vm13, %v2705_v48  ;;  %v1204_v15 = vsel %vm1200_vm12, 65537, %v2327_v25  ;;  %vm1073_vm13 = vcmp.ne.s32.totalorder %v1069_v17, 0  ;;  %vm768_vm12 = vcmp.ge.bf16.partialorder %v2616_v4, 0 }
 0x405   : > { %1821 = vmatpush3.bf16.msra.mxu1 %v2038_v20  ;;  %1836 = vmatprep.mubr.msk.bf16.mxu1 %vm1619_vm14, %v2709_v49  ;;  %v1208_v20 = vunpack.c.l.b16 %v1204_v15  ;;  %vm1074_vm14 = vcmp.ne.s32.totalorder %v1070_v18, 0  ;;  %v772_v0 = vsel %vm768_vm12, 65537, %v2327_v25 }
 0x406   : > { %1822 = vmatprep.subr.bf16.mxu1 %v2039_v50  ;;  %vm1636_vm1 = vmpackc.low %vm1074_vm14, %vm1073_vm13  ;;  %vm771_vm13 = vcmp.ge.bf16.partialorder %v2627_v12, 0  ;;  %vm769_vm14 = vcmp.ge.bf16.partialorder %v2619_v5, 0 }
 0x407   : > { %vm1212_vm0 = vcmp.ne.s32.totalorder %v1208_v20, 0  ;;  %v773_v11 = vsel %vm769_vm14, 65537, %v2327_v25 }
 0x408   : > { %vm1647_vm2 = vmpackc.low %vm1212_vm0, %vm1211_vm15 }
 0x409   : > { %1823 = vmatpush3.bf16.msra.mxu1 %v2039_v50 }
 0x40a   : > { %1824 = vmatprep.subr.bf16.mxu1 %v2040_v51 }
 0x40d   : > { %1825 = vmatpush3.bf16.msra.mxu1 %v2040_v51 }
 0x40e   : > { %1826 = vmatprep.subr.bf16.mxu1 %v2041_v52 }
 0x411   : > { %1827 = vmatpush3.bf16.msra.mxu1 %v2041_v52 }
 0x412   : > { %1828 = vmatprep.subr.bf16.mxu1 %v2042_v53 }
 0x415   : > { %1829 = vmatpush3.bf16.msra.mxu1 %v2042_v53 }
 0x416   : > { %1830 = vmatprep.subr.bf16.mxu1 %v2043_v54 }
 0x419   : > { %1831 = vmatpush3.bf16.msra.mxu1 %v2043_v54 }
 0x41a   : > { %1832 = vmatprep.subr.bf16.mxu1 %v2044_v55 }
 0x41d   : > { %1833 = vmatpush3.bf16.msra.mxu1 %v2044_v55 }
 0x41e   : > { %1834 = vmatprep.subr.bf16.mxu1 %v2045_v60 }
 0x421   : > { %1835 = vmatpush3.bf16.msra.mxu1 %v2045_v60 }
 0x422   : > { %1840 = vmatprep.subr.bf16.mxu1 %v2046_v1 }
 0x424   : > { %1837 = vmatmul.mubr.msk.bf16.vlgmr.msra.gmra.mrb[0].mxu1 %vm1622_vm7, %v2705_v48  ;;  %vm1650_vm7 = vmpackc.low %vm1214_vm6, %vm1213_vm5 }
 0x425   : > { %1841 = vmatpush3.bf16.msra.mxu1 %v2046_v1  ;;  %1856 = vmatprep.mubr.msk.bf16.mxu1 %vm1633_vm8, %v2709_v49  ;;  %vm1341_vm8 = vcmp.ge.s32.totalorder %v1340_v35, 8  ;;  %v775_v1 = vsel %vm771_vm13, 65537, %v2327_v25 }
 0x426   : > { %1842 = vmatprep.subr.bf16.mxu1 %v2047_v2  ;;  %vm2739_vm10 = vmand %vm1341_vm8, %vm1342_vm9 }
 0x429   : > { %1843 = vmatpush3.bf16.msra.mxu1 %v2047_v2  ;;  %v778_v2 = vunpack.c.l.b16 %v774_v63 }
 0x42a   : > { %1844 = vmatprep.subr.bf16.mxu1 %v2048_v3 }
 0x42b   : > { %vm2772_vm15 = vcmp.ne.s32.totalorder %v778_v2, 0 }
 0x42c   : > { %v786_v17 = vsel %vm2772_vm15, %v2688_v44, 0.0 }
 0x42d   : > { %1845 = vmatpush3.bf16.msra.mxu1 %v2048_v3  ;;  %v776_v3 = vunpack.c.l.b16 %v772_v0 }
 0x42e   : > { %1846 = vmatprep.subr.bf16.mxu1 %v2049_v6 }
 0x42f   : > { %vm2776_vm0 = vcmp.ne.s32.totalorder %v776_v3, 0 }
 0x431   : > { %1847 = vmatpush3.bf16.msra.mxu1 %v2049_v6  ;;  %v779_v6 = vunpack.c.l.b16 %v775_v1 }
 0x432   : > { %1848 = vmatprep.subr.bf16.mxu1 %v2050_v7 }
 0x435   : > { %1849 = vmatpush3.bf16.msra.mxu1 %v2050_v7  ;;  %v777_v7 = vunpack.c.l.b16 %v773_v11 }
 0x436   : > { %1850 = vmatprep.subr.bf16.mxu1 %v2051_v8 }
 0x439   : > { %1851 = vmatpush3.bf16.msra.mxu1 %v2051_v8 }
 0x43a   : > { %1852 = vmatprep.subr.bf16.mxu1 %v2052_v9 }
 0x43d   : > { %1853 = vmatpush3.bf16.msra.mxu1 %v2052_v9 }
 0x43e   : > { %1854 = vmatprep.subr.bf16.mxu1 %v2053_v16 }
 0x441   : > { %1855 = vmatpush3.bf16.msra.mxu1 %v2053_v16 }
 0x442   : > { %1860 = vmatprep.subr.bf16.mxu1 %v2054_v21 }
 0x444   : > { %1857 = vmatmul.mubr.msk.bf16.vlgmr.msra.gmra.mrb[0].mxu1 %vm1636_vm1, %v2705_v48  ;;  %vm2780_vm1 = vcmp.ne.s32.totalorder %v779_v6, 0 }
 0x445   : > { %1861 = vmatpush3.bf16.msra.mxu1 %v2054_v21  ;;  %1876 = vmatprep.mubr.msk.bf16.mxu1 %vm1647_vm2, %v2709_v49  ;;  %vm2790_vm2 = vcmp.ne.s32.totalorder %v777_v7, 0  ;;  %v784_v21 = vsel %vm2776_vm0, %v2694_v46, 0.0  ;;  %v787_v44 = vsel %vm2780_vm1, %v2691_v45, 0.0 }
 0x446   : > { %1862 = vmatprep.subr.bf16.mxu1 %v2055_v22  ;;  %v785_v46 = vsel %vm2790_vm2, %v2697_v47, 0.0 }
 0x449   : > { %1863 = vmatpush3.bf16.msra.mxu1 %v2055_v22 }
 0x44a   : > { %1864 = vmatprep.subr.bf16.mxu1 %v2056_v23 }
 0x44d   : > { %1865 = vmatpush3.bf16.msra.mxu1 %v2056_v23 }
 0x44e   : > { %1866 = vmatprep.subr.bf16.mxu1 %v2057_v24 }
 0x451   : > { %1867 = vmatpush3.bf16.msra.mxu1 %v2057_v24 }
 0x452   : > { %1868 = vmatprep.subr.bf16.mxu1 %v2058_v26 }
 0x455   : > { %1869 = vmatpush3.bf16.msra.mxu1 %v2058_v26 }
 0x456   : > { %1870 = vmatprep.subr.bf16.mxu1 %v2059_v27 }
 0x459   : > { %1871 = vmatpush3.bf16.msra.mxu1 %v2059_v27 }
 0x45a   : > { %1872 = vmatprep.subr.bf16.mxu1 %v2060_v28 }
 0x45d   : > { %1873 = vmatpush3.bf16.msra.mxu1 %v2060_v28 }
 0x45e   : > { %1874 = vmatprep.subr.bf16.mxu1 %v2061_v31 }
 0x461   : > { %1875 = vmatpush3.bf16.msra.mxu1 %v2061_v31 }
 0x464   : > { %1877 = vmatmul.mubr.msk.bf16.vlgmr.msra.gmra.mrb[0].mxu1 %vm1650_vm7, %v2705_v48 }
 0x537   : > { %v2743_v37 = vpop.f32.mrb[0].mxu1 }
 0x538   : > { %v1346_v38 = vsel %vm2739_vm10, %v2743_v37, -1e+30  ;;  %v2748_v39 = vpop.f32.mrb[1].mxu1 }
 0x539   : > { %v1352_v40 = vmul.f32 1.442695, %v1346_v38  ;;  %v1344_v41 = vsel %vm2739_vm10, %v2748_v39, -1e+30  ;;  %v2753_v42 = vpop.f32.mrb[2].mxu1 }
 0x53a   : > { %v1348_v43 = vmul.f32 1.442695, %v1344_v41  ;;  %v1347_v48 = vsel %vm2739_vm10, %v2753_v42, -1e+30  ;;  %v2758_v49 = vpop.f32.mrb[3].mxu1 }
 0x53b   : > { %2086 = vpow2.f32 %v1352_v40  ;;  %v1354_v50 = vmul.f32 1.442695, %v1347_v48  ;;  %v1345_v51 = vsel %vm2739_vm10, %v2758_v49, -1e+30 }
 0x53c   : > { %2088 = vpow2.f32 %v1348_v43  ;;  %v1350_v52 = vmul.f32 1.442695, %v1345_v51 }
 0x53d   : > { %2090 = vpow2.f32 %v1354_v50 }
 0x53e   : > { %2092 = vpow2.f32 %v1350_v52 }
 0x545   : > { %v2087_v53 = vpop.eup %2086 }
 0x546   : > { %v2089_v54 = vpop.eup %2088 }
 0x547   : > { %v2091_v55 = vpop.eup %2090 }
 0x548   : > { %v2093_v56 = vpop.eup %2092  ;;  %v1357_v57 = vpack.c.bf16 %v2091_v55, %v2087_v53 }
 0x549   : > { %v1356_v58 = vpack.c.bf16 %v2093_v56, %v2089_v54 }
 0x54b   : > { %1896 = vmatprep.mubr.bf16.mxu0 %v1356_v58 }
 0x54c   : > { %1897 = vmatmul.mubr.bf16.vlgmr.msra.gmra.mrb[12].mxu0 %v1357_v57 }
 0x61f   : > { %v1898_v59 = vpop.f32.mrb[12].mxu0 }
 0x620   : > { %2094 = vlog2.f32 %v1898_v59  ;;  %v1392_v60 = vpop.f32.mrb[13].mxu0 }
 0x621   : > { %2096 = vlog2.f32 %v1392_v60  ;;  %v1899_v61 = vpop.f32.mrb[14].mxu0 }
 0x622   : > { %2098 = vlog2.f32 %v1899_v61  ;;  %v1395_v62 = vpop.f32.mrb[15].mxu0 }
 0x623   : > { %2100 = vlog2.f32 %v1395_v62 }
 0x62a   : > { %v2095_v4 = vpop.eup %2094 }
 0x62b   : > { %v2097_v8 = vpop.eup %2096  ;;  %v1412_v9 = vmul.f32 0.6931472, %v2095_v4 }
 0x62c   : > { %v2099_v5 = vpop.eup %2098  ;;  %v1408_v13 = vmul.f32 0.6931472, %v2097_v8 }
 0x62d   : > { %v2101_v14 = vpop.eup %2100  ;;  %v1417_v15 = vsub.f32 %v2743_v37, %v1412_v9  ;;  %v1414_v16 = vmul.f32 0.6931472, %v2099_v5 }
 0x62e   : > { %v1415_v18 = vsub.f32 %v2748_v39, %v1408_v13  ;;  %v1410_v20 = vmul.f32 0.6931472, %v2101_v14 }
 0x62f   : > { %v1421_v22 = vsel %vm2739_vm10, %v1417_v15, %v786_v17  ;;  %v1418_v23 = vsub.f32 %v2753_v42, %v1414_v16 }
 0x630   : > { %1425 = vst [vmem:[%s354_s14 + $0x10] sm:$0xff] %v1421_v22  ;;  %v1419_v24 = vsel %vm2739_vm10, %v1415_v18, %v784_v21  ;;  %v1416_v26 = vsub.f32 %v2758_v49, %v1410_v20 }
 0x631   : > { %1423 = vst [vmem:[%s354_s14] sm:$0xff] %v1419_v24  ;;  %v1422_v45 = vsel %vm2739_vm10, %v1418_v23, %v787_v44 }
 0x632   : > { %1426 = vst [vmem:[%s354_s14 + $0x18] sm:$0xff] %v1422_v45  ;;  %v1420_v27 = vsel %vm2739_vm10, %v1416_v26, %v785_v46 }
 0x633   : > { %1424 = vst [vmem:[%s354_s14 + $0x8] sm:$0xff] %v1420_v27 }
 0x634   : > { %2257 = shalt.err (!%p2254_p13)
}
 0x635   : > { %s2258_s9 = scalar_lea.hbm %s2809_s18, 512  ;;  %s2262_s11 = scalar_lea.hbm %s2869_s7, 1024 }
 0x636   : > { %p2259_p9 = scmp.ne.s32.totalorder %s2809_s18, %s2258_s9  ;;  %p2263_p4 = scmp.lt.u32.totalorder %s2809_s18, %s2869_s7 }
 0x637   : > { %p2264_p8 = scmp.lt.u32.totalorder %s2262_s11, %s2258_s9  ;;  %p2266_p3 = scmp.lt.u32.totalorder %s2258_s9, %s2809_s18 }
 0x638   : > { %p2260_p0 = pnand %p2259_p9, %p2542_p10 }
 0x639   : > { %p2265_p6 = por %p2264_p8, %p2263_p4 }
 0x63a   : > { %p2261_p11 = pneg %p2260_p0 }
 0x63b   : > { %p2267_p5 = por %p2266_p3, %p2265_p6 }
 0x63d   : > { %p2268_p7 = pnand %p2267_p5, %p2261_p11 }
 0x63f   : > { %2271 = shalt.err (!%p2268_p7)
}
 0x640   : > { %s2329_s28 = smov 128   ;;  %s2330_s23 = smov 8  }
 0x641   : > { %1930 = dma.vmem_to_hbm [thread:$0]  (%p2542_p10), %s2811_s8, 512, %s2809_s18, %s1428_s10, %s2329_s28, %s2329_s28, %s2330_s23  }
 0x642 PF: > { %s2903_s29 = sld [smem:[#allocation16_spill]]  ;;  %s1456_s16 = sand.u32 1, %s2306_s24  }
 0x643   : > { %p2905_p1 = scmp.ge.s32.totalorder %s2318_s27, 2  ;;  %s1457_s21 = scalar_lea.sflag [#allocation4], %s1456_s16 }
 0x648   : > { %p2904_p12 = scmp.ne.s32.totalorder %s2903_s29, 0 }
 0x64a   : > { %p1950_p2 = pnand %p2905_p1, %p2904_p12 }
 0x64c   : > { %2301 = dma.done.wait (!%p1950_p2), %s1457_s21, 512  }
 0x64d   : > { %2303 = vsyncadd (!%p1950_p2), %s1457_s21, 4294966784  ;;  %p22_p13 = scmp.ge.s32.totalorder %s2532_s22, 4   ;;  %s2906_s24 = smov %s2310_s25 }
 0x64e   : > { %s2907_s25 = smov %s2314_s26  ;;  %s2908_s26 = smov %s2548_s20 }
 0x64f   : > { %s2909_s27 = smov %s2532_s22  ;;  %24 = sbr.rel (!%p22_p13) target bundleno = 7 (0x7), region = 112 }
 0x656   :  { %1462 = vsyncpa [#allocation3], 1 }
 0x657   :  { %1464 = vsyncpa [#allocation3 + $0x1], 1 }
 0x658   :  { %1465 = vsyncpa [#allocation6], 1 }
 0x659   :  { %1466 = vsyncpa [#allocation9], 1 }
 0x65a   :  { %1467 = vsyncpa [#allocation4], 1 }
 0x65b   :  { %1469 = vsyncpa [#allocation4 + $0x1], 1 }

</bundles_post_ra>
